<compile_context>
chip_gen: v6e
topology: v6e:2x2x1
jax: 0.10.0
libtpu: 0.0.40
codegen_flags: <defaults>
</compile_context>

<pallas_src>
import jax
import jax.numpy as jnp
from jax import lax
from jax.experimental import pallas as pl
from jax.experimental.pallas import tpu as pltpu

K = 3          # kernel_size
STRIDE = 2
PADDING = 1
OUT_PAD = 1    # output_padding
EPS = 1e-5     # nn.BatchNorm2d default eps

# TODO(synk): BatchNorm running_mean/running_var buffer updates (momentum=0.9) are a
# training-time side effect that does not change the forward output; not computed here.


def _round_up(x, m):
    return (x + m - 1) // m * m


def _vmem_budget_bytes():
    """Generation-aware VMEM budget: 75% of physical per-core VMEM (v5e/v6e: 128 MiB,
    v7x: 64 MiB).  Falls back to the smallest generation (v7x) if the query fails."""
    try:
        cap = int(pltpu.get_tpu_info().vmem_capacity_bytes)
    except Exception:
        cap = 64 * 1024 * 1024
    return max(16 * 1024 * 1024, (cap * 3) // 4)


# --------------------------------------------------------------------------------------
# Kernels
# --------------------------------------------------------------------------------------
def _convt_stats_kernel(x_ref, w_ref, stat_ref):
    """Pass 1: per-channel sum / sum-of-squares of the ConvTranspose output, accumulated
    across the row-tile grid axis into a VMEM-resident (2, 4*Cout) block."""
    # x_ref: (TR, 4*Cin) bf16 ; w_ref: (4*Cin, 4*Cout) bf16 ; stat_ref: (2, 4*Cout) f32
    acc = jnp.dot(x_ref[...], w_ref[...], preferred_element_type=jnp.float32)
    s = jnp.sum(acc, axis=0, keepdims=True)                     # (1, 4*Cout)
    ss = jnp.sum(acc * acc, axis=0, keepdims=True)              # (1, 4*Cout)

    @pl.when(pl.program_id(0) == 0)
    def _():
        stat_ref[...] = jnp.zeros_like(stat_ref)

    stat_ref[...] += jnp.concatenate([s, ss], axis=0)
    # TODO(synk): sum / sum-of-squares in f32 can cancel for very large counts or a
    # large mean/std ratio; switch to per-tile mean-centered (Welford) partials if that
    # regime matters.


def _convt_bn_relu_kernel(x_ref, w_ref, scale_ref, bias_ref, o_ref):
    """Pass 2: recompute the conv tile (one MXU matmul), apply folded BatchNorm
    (scale/bias) + ReLU, store lane-dense bf16."""
    # o_ref: (TR, 4*Cout) bf16 -- sub-pixel layout: column = (ry*2+rx)*Cout + co
    acc = jnp.dot(x_ref[...], w_ref[...], preferred_element_type=jnp.float32)
    y = acc * scale_ref[...] + bias_ref[...]                    # BatchNorm folded
    o_ref[...] = jnp.maximum(y, 0.0).astype(o_ref.dtype)        # ReLU


# --------------------------------------------------------------------------------------
# Wrapper
# --------------------------------------------------------------------------------------
def _build_subpixel_weight(w_pt):
    """ConvTranspose2d weight (Cin, Cout, 3, 3) -> (4*Cin, 4*Cout) sub-pixel weight.

    Row index    = dx*2*Cin + dy*Cin + ci   (tap x[py+dy, px+dx, ci])
    Column index = (ry*2 + rx)*Cout + co    (output pixel (2*py+ry, 2*px+rx, co))
    A tap contributes iff (ky, kx) = (ry - 2*dy + 1, rx - 2*dx + 1) lies in [0, K).
    """
    cin, cout = w_pt.shape[0], w_pt.shape[1]
    wm = jnp.zeros((4 * cin, 4 * cout), jnp.float32)
    for dy in (0, 1):
        for dx in (0, 1):
            for ry in (0, 1):
                for rx in (0, 1):
                    ky = ry - 2 * dy + 1
                    kx = rx - 2 * dx + 1
                    if 0 <= ky < K and 0 <= kx < K:
                        r0 = (dx * 2 + dy) * cin
                        c0 = (ry * 2 + rx) * cout
                        wm = wm.at[r0:r0 + cin, c0:c0 + cout].set(w_pt[:, :, ky, kx])
    return wm


def _pick_row_tile(rows_total, cin, cout, vmem_budget, itemsize):
    """Pick TR (matmul rows per grid step): as large as the VMEM budget allows
    (double-buffered bf16 in/out streams + f32 epilogue temporaries), <= 8192 rows,
    sublane-aligned."""
    in_lanes = _round_up(4 * cin, 128)
    out_lanes = _round_up(4 * cout, 128)
    bytes_per_row = (2 * in_lanes * itemsize          # double-buffered input stream
                     + 2 * out_lanes * itemsize       # double-buffered output stream
                     + 3 * out_lanes * 4)             # f32 acc / epilogue temporaries
    fixed = 2 * _round_up(4 * cin, 16) * out_lanes * itemsize + 256 * 1024
    cap = max(256, (vmem_budget - fixed) // max(bytes_per_row, 1))
    tr = int(min(rows_total, cap, 8192))
    tr = max(8, (tr // 8) * 8)
    return tr


def decoder_block_forward(x_nchw, w_pt, gamma, beta, *, operand_dtype=jnp.bfloat16):
    """x_nchw: (N, Cin, H, W); w_pt: ConvTranspose2d weight (Cin, Cout, 3, 3)."""
    n, cin, h, w = x_nchw.shape
    cout = w_pt.shape[1]
    hout = (h - 1) * STRIDE - 2 * PADDING + K + OUT_PAD   # = 2*h
    wout = (w - 1) * STRIDE - 2 * PADDING + K + OUT_PAD   # = 2*w

    # ---- matmul-ready operand (one fused XLA pass over x) ----
    # Stack the 4 stride-2 taps on the channel axis; column order matches the row order
    # of _build_subpixel_weight: [x[py,px], x[py+1,px], x[py,px+1], x[py+1,px+1]].
    # TODO(synk): this duplicates the input ~4x in HBM; for large-Cin decoder stages
    # prefer a 2*Cin stack + manual (TH+1)-row DMA to cut input-side traffic.
    x = jnp.transpose(x_nchw, (0, 2, 3, 1)).astype(operand_dtype)      # (N,H,W,Cin)
    xp = jnp.pad(x, ((0, 0), (0, 1), (0, 1), (0, 0)))                  # (N,H+1,W+1,Cin)
    x2d = jnp.concatenate(
        [xp[:, :h, :w, :], xp[:, 1:, :w, :], xp[:, :h, 1:, :], xp[:, 1:, 1:, :]],
        axis=-1).reshape(n * h * w, 4 * cin)                           # (rows, 4*Cin)

    # One-time weight precompute (would be cached per weight update in a real model).
    wmat = _build_subpixel_weight(w_pt).astype(operand_dtype)          # (4Cin, 4Cout)

    rows_total = n * h * w
    vmem_budget = _vmem_budget_bytes()
    itemsize = jnp.dtype(operand_dtype).itemsize
    tr = _pick_row_tile(rows_total, cin, cout, vmem_budget, itemsize)
    rows_padded = _round_up(rows_total, tr)
    if rows_padded != rows_total:
        # Zero rows give zero conv output: they add nothing to sum / sum-of-squares
        # (count uses the true N*Hout*Wout) and are sliced off pass 2's output.
        x2d = jnp.pad(x2d, ((0, rows_padded - rows_total), (0, 0)))
    grid = (rows_padded // tr,)

    x_spec = pl.BlockSpec((tr, 4 * cin), lambda i: (i, 0))
    w_spec = pl.BlockSpec((4 * cin, 4 * cout), lambda i: (0, 0))
    vec_spec = pl.BlockSpec((1, 4 * cout), lambda i: (0, 0))

    # ---- pass 1: conv-output channel sums / sums-of-squares (accumulated in VMEM) ----
    stat = pl.pallas_call(
        _convt_stats_kernel,
        out_shape=jax.ShapeDtypeStruct((2, 4 * cout), jnp.float32),
        grid=grid,
        in_specs=[x_spec, w_spec],
        out_specs=pl.BlockSpec((2, 4 * cout), lambda i: (0, 0)),
        compiler_params=pltpu.CompilerParams(
            dimension_semantics=("arbitrary",), vmem_limit_bytes=vmem_budget),
    )(x2d, wmat)

    # ---- global BatchNorm stats (train mode, biased var) folded into scale/bias ----
    tot = stat.reshape(2, 4, cout).sum(axis=1)          # fold the 4 sub-pixel parities
    count = n * hout * wout
    mean = tot[0] / count
    var = jnp.maximum(tot[1] / count - mean * mean, 0.0)
    scale = gamma.astype(jnp.float32) * lax.rsqrt(var + EPS)
    bias = beta.astype(jnp.float32) - mean * scale
    scale4 = jnp.tile(scale, 4).reshape(1, 4 * cout)    # broadcast over the 4 parities
    bias4 = jnp.tile(bias, 4).reshape(1, 4 * cout)

    # ---- pass 2: recompute conv, fused scale/shift + ReLU, lane-dense bf16 store ----
    # TODO(synk): on v5e with large Cin/Cout (MXU-bound) stash the bf16 conv output from
    # pass 1 instead of recomputing it; recompute stays cheaper on v6e/v7x.
    y2d = pl.pallas_call(
        _convt_bn_relu_kernel,
        out_shape=jax.ShapeDtypeStruct((rows_padded, 4 * cout), operand_dtype),
        grid=grid,
        in_specs=[x_spec, w_spec, vec_spec, vec_spec],
        out_specs=pl.BlockSpec((tr, 4 * cout), lambda i: (i, 0)),
        compiler_params=pltpu.CompilerParams(
            dimension_semantics=("parallel",), vmem_limit_bytes=vmem_budget),
    )(x2d, wmat, scale4, bias4)

    # Sub-pixel layout -> NCHW (single bf16-read transpose + f32 cast, fused in XLA).
    y = y2d[:rows_total].reshape(n, h, w, 2, 2, cout)
    y = jnp.transpose(y, (0, 5, 1, 3, 2, 4)).reshape(n, cout, hout, wout)
    return y.astype(jnp.float32)


# --------------------------------------------------------------------------------------
# Reference + test
# --------------------------------------------------------------------------------------
def reference_forward(x_nchw, w_pt, gamma, beta, *, operand_dtype=jnp.bfloat16):
    """Pure-JAX reference matching ConvTranspose2d + BatchNorm2d(train) + ReLU.

    The conv uses the same bf16-operand / f32-accumulate precision as the kernel so the
    comparison isolates kernel correctness.  Versus full-f32 PyTorch math, both differ
    by bf16 operand rounding -- an intentional MXU precision trade-off."""
    w_flip = jnp.transpose(jnp.flip(w_pt, axis=(2, 3)), (1, 0, 2, 3))  # (Cout,Cin,K,K)
    pad_lo = K - 1 - PADDING
    pad_hi = K - 1 - PADDING + OUT_PAD
    conv = lax.conv_general_dilated(
        x_nchw.astype(operand_dtype), w_flip.astype(operand_dtype),
        window_strides=(1, 1),
        padding=((pad_lo, pad_hi), (pad_lo, pad_hi)),
        lhs_dilation=(STRIDE, STRIDE),
        dimension_numbers=('NCHW', 'OIHW', 'NCHW'),
        preferred_element_type=jnp.float32)
    mean = conv.mean(axis=(0, 2, 3), keepdims=True)
    var = ((conv - mean) ** 2).mean(axis=(0, 2, 3), keepdims=True)
    y = (conv - mean) * lax.rsqrt(var + EPS) * gamma.reshape(1, -1, 1, 1) \
        + beta.reshape(1, -1, 1, 1)
    return jnp.maximum(y, 0.0)


if __name__ == "__main__":
    key = jax.random.PRNGKey(0)
    k_x, k_w = jax.random.split(key)

    # Small decoder-ish shapes: 16 -> 32 channels, 16x16 -> 32x32 spatial.
    N, C_IN, C_OUT, H, W = 2, 16, 32, 16, 16
    x = jax.random.normal(k_x, (N, C_IN, H, W), dtype=jnp.float32)

    # ConvTranspose2d weight (in_channels, out_channels, kH, kW), kaiming-uniform-ish.
    fan_in = C_IN * K * K
    bound = 1.0 / (fan_in ** 0.5)
    w_pt = jax.random.uniform(k_w, (C_IN, C_OUT, K, K), jnp.float32, -bound, bound)

    # BatchNorm2d default affine init: gamma = 1, beta = 0.
    gamma = jnp.ones((C_OUT,), jnp.float32)
    beta = jnp.zeros((C_OUT,), jnp.float32)

    fwd = jax.jit(decoder_block_forward)
    out = jax.block_until_ready(fwd(x, w_pt, gamma, beta))
    ref = jax.block_until_ready(reference_forward(x, w_pt, gamma, beta))

    assert out.shape == (N, C_OUT, 2 * H, 2 * W), out.shape
    # Tolerance covers the intentional bf16 output store (<= ~0.4% relative half-ULP)
    # on top of bf16-operand MXU math; f32 intermediate-path differences are ~1e-6.
    max_err = float(jnp.max(jnp.abs(out - ref)))
    assert jnp.allclose(out, ref, rtol=1e-2, atol=1e-2), max_err

    print("KERNEL_OK")
</pallas_src>

<mosaic_0001>
module attributes {stable_mosaic.version = 11 : i64} {
  func.func @_convt_stats_kernel(%arg0: i32, %arg1: memref<512x64xbf16, #tpu.memory_space<vmem>>, %arg2: memref<64x128xbf16, #tpu.memory_space<vmem>>, %arg3: memref<2x128xf32, #tpu.memory_space<vmem>>) attributes {dimension_semantics = [#tpu.dimension_semantics<arbitrary>], iteration_bounds = array<i64: 1>, scalar_prefetch = 0 : i64, scratch_operands = 0 : i64, tpu.core_type = #tpu.core_type<tc>, window_params = [{transform_indices = @transform_0, window_bounds = array<i64: 512, 64>}, {pipeline_mode = #tpu.pipeline_mode<synchronous>, transform_indices = @transform_1, window_bounds = array<i64: 64, 128>}, {pipeline_mode = #tpu.pipeline_mode<synchronous>, transform_indices = @transform_2, window_bounds = array<i64: 2, 128>}]} {
    %c0 = arith.constant 0 : index
    %c0_0 = arith.constant 0 : index
    %0 = vector.load %arg1[%c0, %c0_0] : memref<512x64xbf16, #tpu.memory_space<vmem>>, vector<512x64xbf16>
    %c0_1 = arith.constant 0 : index
    %c0_2 = arith.constant 0 : index
    %1 = vector.load %arg2[%c0_1, %c0_2] : memref<64x128xbf16, #tpu.memory_space<vmem>>, vector<64x128xbf16>
    %cst = arith.constant dense<0.000000e+00> : vector<512x128xf32>
    %2 = tpu.matmul %0, %1, %cst {dimension_numbers = #tpu.dot_dimension_numbers<[1], [0], [0], [1], [0, 0, 1, 1], [], []>} : vector<512x64xbf16>, vector<64x128xbf16>, vector<512x128xf32> -> vector<512x128xf32>
    %cst_3 = arith.constant dense<0.000000e+00> : vector<128xf32>
    %3 = vector.multi_reduction <add>, %2, %cst_3 [0] : vector<512x128xf32> to vector<128xf32>
    %4 = vector.shape_cast %3 : vector<128xf32> to vector<1x128xf32>
    %5 = arith.mulf %2, %2 : vector<512x128xf32>
    %cst_4 = arith.constant dense<0.000000e+00> : vector<128xf32>
    %6 = vector.multi_reduction <add>, %5, %cst_4 [0] : vector<512x128xf32> to vector<128xf32>
    %7 = vector.shape_cast %6 : vector<128xf32> to vector<1x128xf32>
    %c0_i32 = arith.constant 0 : i32
    %8 = arith.cmpi eq, %arg0, %c0_i32 : i32
    %9 = arith.extui %8 : i1 to i32
    %c0_i32_5 = arith.constant 0 : i32
    %10 = arith.cmpi ne, %9, %c0_i32_5 : i32
    scf.if %10 {
      %cst_10 = arith.constant 0.000000e+00 : f32
      %15 = vector.broadcast %cst_10 : f32 to vector<2x128xf32>
      %c0_11 = arith.constant 0 : index
      %c0_12 = arith.constant 0 : index
      %16 = vector.load %arg3[%c0_11, %c0_12] : memref<2x128xf32, #tpu.memory_space<vmem>>, vector<2x128xf32>
      tpu.vector_store %arg3[%c0_11, %c0_12], %15 {strides = array<i32>} : memref<2x128xf32, #tpu.memory_space<vmem>>, vector<2x128xf32>,
    } else {
    }
    %c0_6 = arith.constant 0 : index
    %c0_7 = arith.constant 0 : index
    %11 = vector.load %arg3[%c0_6, %c0_7] : memref<2x128xf32, #tpu.memory_space<vmem>>, vector<2x128xf32>
    %12 = tpu.concatenate %4, %7 in 0 : vector<1x128xf32>, vector<1x128xf32> -> vector<2x128xf32>
    %13 = arith.addf %11, %12 : vector<2x128xf32>
    %c0_8 = arith.constant 0 : index
    %c0_9 = arith.constant 0 : index
    %14 = vector.load %arg3[%c0_8, %c0_9] : memref<2x128xf32, #tpu.memory_space<vmem>>, vector<2x128xf32>
    tpu.vector_store %arg3[%c0_8, %c0_9], %13 {strides = array<i32>} : memref<2x128xf32, #tpu.memory_space<vmem>>, vector<2x128xf32>,
    return
  }
  func.func @transform_0(%arg0: i32) -> (i32, i32) {
    %c0_i32 = arith.constant 0 : i32
    %c0_i32_0 = arith.constant 0 : i32
    return %arg0, %c0_i32 : i32, i32
  }
  func.func @transform_1(%arg0: i32) -> (i32, i32) {
    %c0_i32 = arith.constant 0 : i32
    %c0_i32_0 = arith.constant 0 : i32
    %c0_i32_1 = arith.constant 0 : i32
    return %c0_i32, %c0_i32_0 : i32, i32
  }
  func.func @transform_2(%arg0: i32) -> (i32, i32) {
    %c0_i32 = arith.constant 0 : i32
    %c0_i32_0 = arith.constant 0 : i32
    %c0_i32_1 = arith.constant 0 : i32
    return %c0_i32, %c0_i32_0 : i32, i32
  }
}

module attributes {stable_mosaic.version = 11 : i64} {
  func.func @_convt_bn_relu_kernel(%arg0: i32, %arg1: memref<512x64xbf16, #tpu.memory_space<vmem>>, %arg2: memref<64x128xbf16, #tpu.memory_space<vmem>>, %arg3: memref<1x128xf32, #tpu.memory_space<vmem>>, %arg4: memref<1x128xf32, #tpu.memory_space<vmem>>, %arg5: memref<512x128xbf16, #tpu.memory_space<vmem>>) attributes {dimension_semantics = [#tpu.dimension_semantics<parallel>], iteration_bounds = array<i64: 1>, scalar_prefetch = 0 : i64, scratch_operands = 0 : i64, tpu.core_type = #tpu.core_type<tc>, window_params = [{transform_indices = @transform_0, window_bounds = array<i64: 512, 64>}, {pipeline_mode = #tpu.pipeline_mode<synchronous>, transform_indices = @transform_1, window_bounds = array<i64: 64, 128>}, {pipeline_mode = #tpu.pipeline_mode<synchronous>, transform_indices = @transform_2, window_bounds = array<i64: 1, 128>}, {pipeline_mode = #tpu.pipeline_mode<synchronous>, transform_indices = @transform_3, window_bounds = array<i64: 1, 128>}, {transform_indices = @transform_4, window_bounds = array<i64: 512, 128>}]} {
    %c0 = arith.constant 0 : index
    %c0_0 = arith.constant 0 : index
    %0 = vector.load %arg1[%c0, %c0_0] : memref<512x64xbf16, #tpu.memory_space<vmem>>, vector<512x64xbf16>
    %c0_1 = arith.constant 0 : index
    %c0_2 = arith.constant 0 : index
    %1 = vector.load %arg2[%c0_1, %c0_2] : memref<64x128xbf16, #tpu.memory_space<vmem>>, vector<64x128xbf16>
    %cst = arith.constant dense<0.000000e+00> : vector<512x128xf32>
    %2 = tpu.matmul %0, %1, %cst {dimension_numbers = #tpu.dot_dimension_numbers<[1], [0], [0], [1], [0, 0, 1, 1], [], []>} : vector<512x64xbf16>, vector<64x128xbf16>, vector<512x128xf32> -> vector<512x128xf32>
    %c0_3 = arith.constant 0 : index
    %c0_4 = arith.constant 0 : index
    %3 = vector.load %arg3[%c0_3, %c0_4] : memref<1x128xf32, #tpu.memory_space<vmem>>, vector<1x128xf32>
    %4 = vector.broadcast %3 : vector<1x128xf32> to vector<512x128xf32>
    %5 = arith.mulf %2, %4 : vector<512x128xf32>
    %c0_5 = arith.constant 0 : index
    %c0_6 = arith.constant 0 : index
    %6 = vector.load %arg4[%c0_5, %c0_6] : memref<1x128xf32, #tpu.memory_space<vmem>>, vector<1x128xf32>
    %7 = vector.broadcast %6 : vector<1x128xf32> to vector<512x128xf32>
    %8 = arith.addf %5, %7 : vector<512x128xf32>
    %cst_7 = arith.constant 0.000000e+00 : f32
    %9 = vector.broadcast %cst_7 : f32 to vector<512x128xf32>
    %10 = arith.maximumf %8, %9 : vector<512x128xf32>
    %11 = arith.truncf %10 : vector<512x128xf32> to vector<512x128xbf16>
    %c0_8 = arith.constant 0 : index
    %c0_9 = arith.constant 0 : index
    %12 = vector.load %arg5[%c0_8, %c0_9] : memref<512x128xbf16, #tpu.memory_space<vmem>>, vector<512x128xbf16>
    tpu.vector_store %arg5[%c0_8, %c0_9], %11 {strides = array<i32>} : memref<512x128xbf16, #tpu.memory_space<vmem>>, vector<512x128xbf16>,
    return
  }
  func.func @transform_0(%arg0: i32) -> (i32, i32) {
    %c0_i32 = arith.constant 0 : i32
    %c0_i32_0 = arith.constant 0 : i32
    return %arg0, %c0_i32 : i32, i32
  }
  func.func @transform_1(%arg0: i32) -> (i32, i32) {
    %c0_i32 = arith.constant 0 : i32
    %c0_i32_0 = arith.constant 0 : i32
    %c0_i32_1 = arith.constant 0 : i32
    return %c0_i32, %c0_i32_0 : i32, i32
  }
  func.func @transform_2(%arg0: i32) -> (i32, i32) {
    %c0_i32 = arith.constant 0 : i32
    %c0_i32_0 = arith.constant 0 : i32
    %c0_i32_1 = arith.constant 0 : i32
    return %c0_i32, %c0_i32_0 : i32, i32
  }
  func.func @transform_3(%arg0: i32) -> (i32, i32) {
    %c0_i32 = arith.constant 0 : i32
    %c0_i32_0 = arith.constant 0 : i32
    %c0_i32_1 = arith.constant 0 : i32
    return %c0_i32, %c0_i32_0 : i32, i32
  }
  func.func @transform_4(%arg0: i32) -> (i32, i32) {
    %c0_i32 = arith.constant 0 : i32
    %c0_i32_0 = arith.constant 0 : i32
    return %arg0, %c0_i32 : i32, i32
  }
}

</mosaic_0001>

<bundles_post_ra>
// kernel: tile.18
= control target key start
LH: loop header
LB: loop body
LE: loop exit
PB: predicated region body
PF: predicated region fallthrough
CT: control target
= control target key end

     0   :  { %s22_s0 = inlined_call_operand.vmem [shape: f32[32], index: 0, kind: input, shape index: {}]   ;;  %s23_s1 = inlined_call_operand.vmem [shape: f32[4,32], index: 1, kind: output, shape index: {}]  }
   0x1   :  { %v4_v0 = vld [vmem:[%s22_s0] ss:$0 sm:$0xff] }
   0x2   :  { %5 = vst [vmem:[%s23_s1] sm:$0xf] %v4_v0 }

// kernel: tile.19
= control target key start
LH: loop header
LB: loop body
LE: loop exit
PB: predicated region body
PF: predicated region fallthrough
CT: control target
= control target key end

     0   :  { %vm8_vm0 = vcmask 261120   ;;  %s40_s8 = smov 32   ;;  %s41_s9 = smov 64   ;;  %vm14_vm1 = vcmask 1048320   ;;  %vm20_vm2 = vcmask 785920   ;;  %vm26_vm3 = vcmask 523520   ;;  %s58_s0 = inlined_call_operand.vmem [shape: f32[4,32], index: 0, kind: input, shape index: {}]   ;;  %s59_s1 = inlined_call_operand.vmem [shape: f32[1,128], index: 1, kind: output, shape index: {}]  }
   0x1   :  { %v5_v0 = vld [vmem:[%s58_s0] sm:$0xf]  ;;  %s39_s0 = smov 96  }
   0x2   :  { %6 = vst [vmem:[#allocation1] sm:$0xf] %v5_v0 }
   0x9   :  { %v11_v1 = vld [vmem:[#allocation1 + $0x3] sm:$0x1]   ;;  %v23_v2 = vld [vmem:[#allocation1 + $0x1] sm:$0x1]   ;;  %v7_v3 = vld [vmem:[#allocation1] sm:$0x1]  }
   0xa   :  { %12 = vrot.lane.b32.xlu0 %v11_v1, %s39_s0  ;;  %24 = vrot.lane.b32.xlu1 %v23_v2, %s40_s8  ;;  %v17_v4 = vld [vmem:[#allocation1 + $0x2] sm:$0x1]   ;;  %9 = vst.msk [vmem:[#allocation0] sm:$0x1] %vm8_vm0, %v7_v3  }
   0xe   :  { %18 = vrot.lane.b32.xlu0 %v17_v4, %s41_s9 }
  0x7c   :  { %v13_v5 = vpop.permute.xlu0 %12   ;;  %v25_v6 = vpop.permute.xlu1 %24  }
  0x7d   :  { %15 = vst.msk [vmem:[#allocation0] sm:$0x1] %vm14_vm1, %v13_v5  }
  0x80   :  { %v19_v7 = vpop.permute.xlu0 %18  }
  0x81   :  { %21 = vst.msk [vmem:[#allocation0] sm:$0x1] %vm20_vm2, %v19_v7  }
  0x82   :  { %27 = vst.msk [vmem:[#allocation0] sm:$0x1] %vm26_vm3, %v25_v6  }
  0x89   :  { %v32_v8 = vld [vmem:[#allocation0] sm:$0x1] }
  0x8a   :  { %35 = vst [vmem:[%s59_s1] sm:$0x1] %v32_v8 }

// kernel: decoder_block_forward.2
= control target key start
LH: loop header
LB: loop body
LE: loop exit
PB: predicated region body
PF: predicated region fallthrough
CT: control target
= control target key end

     0   :  { %vm268_vm0 = vcmask 523264   ;;  %v1091_v56 = vmov 0.0   ;;  %vm862_vm1 = vcmask 1040384   ;;  %s1336_s1 = inlined_call_operand.vmem [shape: bf16[64,128], index: 1, kind: input, shape index: {}]   ;;  %s1337_s0 = inlined_call_operand.vmem [shape: bf16[512,64], index: 0, kind: input, shape index: {}]   ;;  %s1338_s2 = inlined_call_operand.vmem [shape: f32[2,128], index: 2, kind: output, shape index: {}]  }
   0x1   :  { %v1055_v0 = vld [vmem:[%s1336_s1 + $0x18] sm:$0xff]   ;;  %v1056_v1 = vld [vmem:[%s1336_s1 + $0x10] sm:$0xff]   ;;  %v1057_v2 = vld [vmem:[%s1336_s1 + $0x8] sm:$0xff]   ;;  %860 = vst [vmem:[%s1338_s2] sm:$0x3] %v1091_v56 }
   0x2   :  { %974 = vmatprep.subr.bf16.mxu0 %v1055_v0  ;;  %1046 = vmatprep.subr.bf16.mxu1 %v1055_v0  ;;  %v1059_v3 = vld [vmem:[%s1337_s0] sm:$0xff]   ;;  %v1060_v5 = vld [vmem:[%s1337_s0 + $0x8] sm:$0xff]   ;;  %v1061_v6 = vld [vmem:[%s1337_s0 + $0x10] sm:$0xff]  }
   0x3   :  { %975 = vmatpush3.bf16.msra.mxu0 %v1055_v0  ;;  %1050 = vmatpush3.bf16.msra.mxu1 %v1055_v0  ;;  %v1058_v4 = vld [vmem:[%s1336_s1] sm:$0xff]   ;;  %v1062_v7 = vld [vmem:[%s1337_s0 + $0x18] sm:$0xff]   ;;  %v1076_v9 = vld [vmem:[%s1337_s0 + $0x88] sm:$0xff]  }
   0x4   :  { %976 = vmatprep.subr.bf16.mxu0 %v1056_v1  ;;  %1047 = vmatprep.subr.bf16.mxu1 %v1056_v1  ;;  %v1075_v8 = vld [vmem:[%s1337_s0 + $0x80] sm:$0xff]   ;;  %v1077_v10 = vld [vmem:[%s1337_s0 + $0x90] sm:$0xff]   ;;  %v1078_v12 = vld [vmem:[%s1337_s0 + $0x98] sm:$0xff]  }
   0x5   :  { %982 = vmatprep.mubr.msk.bf16.mxu0 %vm268_vm0, %v1059_v3  ;;  %1014 = vmatprep.mubr.msk.bf16.mxu1 %vm268_vm0, %v1075_v8  ;;  %v1063_v11 = vld [vmem:[%s1337_s0 + $0x20] sm:$0xff]   ;;  %v1064_v14 = vld [vmem:[%s1337_s0 + $0x28] sm:$0xff]   ;;  %v1065_v15 = vld [vmem:[%s1337_s0 + $0x30] sm:$0xff]  }
   0x6   :  { %v1079_v13 = vld [vmem:[%s1337_s0 + $0xa0] sm:$0xff]   ;;  %v1080_v16 = vld [vmem:[%s1337_s0 + $0xa8] sm:$0xff]   ;;  %v1081_v17 = vld [vmem:[%s1337_s0 + $0xb0] sm:$0xff]  }
   0x7   :  { %977 = vmatpush3.bf16.msra.mxu0 %v1056_v1  ;;  %1051 = vmatpush3.bf16.msra.mxu1 %v1056_v1  ;;  %v1066_v18 = vld [vmem:[%s1337_s0 + $0x38] sm:$0xff]   ;;  %v1067_v19 = vld [vmem:[%s1337_s0 + $0x40] sm:$0xff]   ;;  %v1068_v22 = vld [vmem:[%s1337_s0 + $0x48] sm:$0xff]  }
   0x8   :  { %978 = vmatprep.subr.bf16.mxu0 %v1057_v2  ;;  %1048 = vmatprep.subr.bf16.mxu1 %v1057_v2  ;;  %v1082_v20 = vld [vmem:[%s1337_s0 + $0xb8] sm:$0xff]   ;;  %v1083_v21 = vld [vmem:[%s1337_s0 + $0xc0] sm:$0xff]   ;;  %v1069_v23 = vld [vmem:[%s1337_s0 + $0x50] sm:$0xff]  }
   0x9   :  { %v1084_v24 = vld [vmem:[%s1337_s0 + $0xc8] sm:$0xff]   ;;  %v1085_v25 = vld [vmem:[%s1337_s0 + $0xd0] sm:$0xff]   ;;  %v1070_v26 = vld [vmem:[%s1337_s0 + $0x58] sm:$0xff]  }
   0xa   :  { %v1071_v27 = vld [vmem:[%s1337_s0 + $0x60] sm:$0xff]   ;;  %v1086_v28 = vld [vmem:[%s1337_s0 + $0xd8] sm:$0xff]   ;;  %v1072_v30 = vld [vmem:[%s1337_s0 + $0x68] sm:$0xff]  }
   0xb   :  { %979 = vmatpush3.bf16.msra.mxu0 %v1057_v2  ;;  %1052 = vmatpush3.bf16.msra.mxu1 %v1057_v2  ;;  %v1087_v29 = vld [vmem:[%s1337_s0 + $0xe0] sm:$0xff]   ;;  %v1073_v31 = vld [vmem:[%s1337_s0 + $0x70] sm:$0xff]   ;;  %v1088_v32 = vld [vmem:[%s1337_s0 + $0xe8] sm:$0xff]  }
   0xc   :  { %980 = vmatprep.subr.bf16.mxu0 %v1058_v4  ;;  %1049 = vmatprep.subr.bf16.mxu1 %v1058_v4  ;;  %v1089_v33 = vld [vmem:[%s1337_s0 + $0xf0] sm:$0xff]   ;;  %v1074_v34 = vld [vmem:[%s1337_s0 + $0x78] sm:$0xff]  }
   0xd   :  { %v1090_v35 = vld [vmem:[%s1337_s0 + $0xf8] sm:$0xff]  }
   0xf   :  { %981 = vmatpush3.bf16.msra.mxu0 %v1058_v4  ;;  %1053 = vmatpush3.bf16.msra.mxu1 %v1058_v4 }
  0x12   :  { %983 = vmatmul.mubr.msk.bf16.vlgmr.msra.gmra.mxu0 %vm268_vm0, %v1060_v5  ;;  %1015 = vmatmul.mubr.msk.bf16.vlgmr.msra.gmra.mxu1 %vm268_vm0, %v1076_v9 }
  0x13   :  { %986 = vmatprep.mubr.msk.bf16.mxu0 %vm268_vm0, %v1061_v6  ;;  %1018 = vmatprep.mubr.msk.bf16.mxu1 %vm268_vm0, %v1077_v10 }
  0x1a   :  { %987 = vmatmul.mubr.msk.bf16.gmra.mxu0 %vm268_vm0, %v1062_v7  ;;  %1019 = vmatmul.mubr.msk.bf16.gmra.mxu1 %vm268_vm0, %v1078_v12 }
  0x1b   :  { %990 = vmatprep.mubr.msk.bf16.mxu0 %vm268_vm0, %v1063_v11  ;;  %1022 = vmatprep.mubr.msk.bf16.mxu1 %vm268_vm0, %v1079_v13 }
  0x22   :  { %991 = vmatmul.mubr.msk.bf16.gmra.mxu0 %vm268_vm0, %v1064_v14  ;;  %1023 = vmatmul.mubr.msk.bf16.gmra.mxu1 %vm268_vm0, %v1080_v16 }
  0x23   :  { %994 = vmatprep.mubr.msk.bf16.mxu0 %vm268_vm0, %v1065_v15  ;;  %1026 = vmatprep.mubr.msk.bf16.mxu1 %vm268_vm0, %v1081_v17 }
  0x2a   :  { %995 = vmatmul.mubr.msk.bf16.gmra.mxu0 %vm268_vm0, %v1066_v18  ;;  %1027 = vmatmul.mubr.msk.bf16.gmra.mxu1 %vm268_vm0, %v1082_v20 }
  0x2b   :  { %998 = vmatprep.mubr.msk.bf16.mxu0 %vm268_vm0, %v1067_v19  ;;  %1030 = vmatprep.mubr.msk.bf16.mxu1 %vm268_vm0, %v1083_v21 }
  0x32   :  { %999 = vmatmul.mubr.msk.bf16.gmra.mxu0 %vm268_vm0, %v1068_v22  ;;  %1031 = vmatmul.mubr.msk.bf16.gmra.mxu1 %vm268_vm0, %v1084_v24 }
  0x33   :  { %1002 = vmatprep.mubr.msk.bf16.mxu0 %vm268_vm0, %v1069_v23  ;;  %1034 = vmatprep.mubr.msk.bf16.mxu1 %vm268_vm0, %v1085_v25 }
  0x3a   :  { %1003 = vmatmul.mubr.msk.bf16.gmra.mxu0 %vm268_vm0, %v1070_v26  ;;  %1035 = vmatmul.mubr.msk.bf16.gmra.mxu1 %vm268_vm0, %v1086_v28 }
  0x3b   :  { %1006 = vmatprep.mubr.msk.bf16.mxu0 %vm268_vm0, %v1071_v27  ;;  %1038 = vmatprep.mubr.msk.bf16.mxu1 %vm268_vm0, %v1087_v29 }
  0x42   :  { %1007 = vmatmul.mubr.msk.bf16.gmra.mxu0 %vm268_vm0, %v1072_v30  ;;  %1039 = vmatmul.mubr.msk.bf16.gmra.mxu1 %vm268_vm0, %v1088_v32 }
  0x43   :  { %1010 = vmatprep.mubr.msk.bf16.mxu0 %vm268_vm0, %v1073_v31  ;;  %1042 = vmatprep.mubr.msk.bf16.mxu1 %vm268_vm0, %v1089_v33 }
  0x4a   :  { %1011 = vmatmul.mubr.msk.bf16.gmra.mxu0 %vm268_vm0, %v1074_v34  ;;  %1043 = vmatmul.mubr.msk.bf16.gmra.mxu1 %vm268_vm0, %v1090_v35 }
  0xd2   :  { %v984_v36 = vpop.f32.mrf.mxu0  ;;  %v1247_v39 = vpop.f32.mrf.mxu1 }
  0xd3   :  { %v725_v46 = vmul.f32 %v984_v36, %v984_v36 }
  0xd4   :  { %v399_v37 = vpop.f32.mrf.mxu0  ;;  %v1249_v44 = vpop.f32.mrf.mxu1 }
  0xd5   :  { %v723_v41 = vmul.f32 %v399_v37, %v399_v37 }
  0xd6   :  { %v985_v38 = vpop.f32.mrf.mxu0  ;;  %v1251_v49 = vpop.f32.mrf.mxu1 }
  0xd7   :  { %v726_v51 = vmul.f32 %v985_v38, %v985_v38 }
  0xd8   :  { %v402_v40 = vpop.f32.mrf.mxu0  ;;  %v1253_v55 = vpop.f32.mrf.mxu1 }
  0xd9   :  { %v654_v42 = vadd.f32 %v402_v40, %v399_v37  ;;  %v724_v43 = vmul.f32 %v402_v40, %v402_v40 }
  0xda   :  { %v988_v45 = vpop.f32.mrf.mxu0  ;;  %v1258_v1 = vpop.f32.mrf.mxu1 }
  0xdb   :  { %v655_v47 = vadd.f32 %v984_v36, %v654_v42  ;;  %v787_v48 = vadd.f32 %v724_v43, %v723_v41  ;;  %v729_v2 = vmul.f32 %v988_v45, %v988_v45 }
  0xdc   :  { %v415_v50 = vpop.f32.mrf.mxu0  ;;  %v1260_v10 = vpop.f32.mrf.mxu1 }
  0xdd   :  { %v788_v52 = vadd.f32 %v787_v48, %v725_v46  ;;  %v656_v53 = vadd.f32 %v985_v38, %v655_v47  ;;  %v727_v58 = vmul.f32 %v415_v50, %v415_v50 }
  0xde   :  { %v989_v54 = vpop.f32.mrf.mxu0  ;;  %v1262_v19 = vpop.f32.mrf.mxu1 }
  0xdf   :  { %v657_v57 = vadd.f32 %v656_v53, %v415_v50  ;;  %v789_v59 = vadd.f32 %v788_v52, %v726_v51  ;;  %v730_v6 = vmul.f32 %v989_v54, %v989_v54 }
  0xe0   :  { %v418_v60 = vpop.f32.mrf.mxu0  ;;  %v1264_v28 = vpop.f32.mrf.mxu1 }
  0xe1   :  { %v790_v61 = vadd.f32 %v789_v59, %v727_v58  ;;  %v658_v62 = vadd.f32 %v657_v57, %v418_v60  ;;  %v728_v63 = vmul.f32 %v418_v60, %v418_v60 }
  0xe2   :  { %v992_v0 = vpop.f32.mrf.mxu0  ;;  %v1266_v37 = vpop.f32.mrf.mxu1 }
  0xe3   :  { %v659_v3 = vadd.f32 %v988_v45, %v658_v62  ;;  %v791_v4 = vadd.f32 %v790_v61, %v728_v63  ;;  %v733_v20 = vmul.f32 %v992_v0, %v992_v0 }
  0xe4   :  { %v431_v5 = vpop.f32.mrf.mxu0  ;;  %v1268_v48 = vpop.f32.mrf.mxu1 }
  0xe5   :  { %v792_v7 = vadd.f32 %v791_v4, %v729_v2  ;;  %v660_v8 = vadd.f32 %v989_v54, %v659_v3  ;;  %v731_v12 = vmul.f32 %v431_v5, %v431_v5 }
  0xe6   :  { %v993_v9 = vpop.f32.mrf.mxu0  ;;  %v1270_v59 = vpop.f32.mrf.mxu1 }
  0xe7   :  { %v661_v11 = vadd.f32 %v660_v8, %v431_v5  ;;  %v793_v13 = vadd.f32 %v792_v7, %v730_v6  ;;  %v734_v24 = vmul.f32 %v993_v9, %v993_v9 }
  0xe8   :  { %v434_v14 = vpop.f32.mrf.mxu0  ;;  %v1272_v5 = vpop.f32.mrf.mxu1 }
  0xe9   :  { %v794_v15 = vadd.f32 %v793_v13, %v731_v12  ;;  %v662_v16 = vadd.f32 %v661_v11, %v434_v14  ;;  %v732_v17 = vmul.f32 %v434_v14, %v434_v14 }
  0xea   :  { %v996_v18 = vpop.f32.mrf.mxu0 }
  0xeb   :  { %v663_v21 = vadd.f32 %v992_v0, %v662_v16  ;;  %v795_v22 = vadd.f32 %v794_v15, %v732_v17  ;;  %v737_v38 = vmul.f32 %v996_v18, %v996_v18  ;;  %v1274_v15 = vpop.f32.mrf.mxu1 }
  0xec   :  { %v447_v23 = vpop.f32.mrf.mxu0 }
  0xed   :  { %v796_v25 = vadd.f32 %v795_v22, %v733_v20  ;;  %v664_v26 = vadd.f32 %v993_v9, %v663_v21  ;;  %v735_v30 = vmul.f32 %v447_v23, %v447_v23 }
  0xee   :  { %v997_v27 = vpop.f32.mrf.mxu0 }
  0xef   :  { %v665_v29 = vadd.f32 %v664_v26, %v447_v23  ;;  %v797_v31 = vadd.f32 %v796_v25, %v734_v24  ;;  %v738_v43 = vmul.f32 %v997_v27, %v997_v27  ;;  %v1276_v25 = vpop.f32.mrf.mxu1 }
  0xf0   :  { %v450_v32 = vpop.f32.mrf.mxu0 }
  0xf1   :  { %v798_v33 = vadd.f32 %v797_v31, %v735_v30  ;;  %v666_v34 = vadd.f32 %v665_v29, %v450_v32  ;;  %v736_v35 = vmul.f32 %v450_v32, %v450_v32 }
  0xf2   :  { %v1000_v36 = vpop.f32.mrf.mxu0 }
  0xf3   :  { %v667_v40 = vadd.f32 %v996_v18, %v666_v34  ;;  %v799_v41 = vadd.f32 %v798_v33, %v736_v35  ;;  %v741_v60 = vmul.f32 %v1000_v36, %v1000_v36  ;;  %v1278_v35 = vpop.f32.mrf.mxu1 }
  0xf4   :  { %v463_v42 = vpop.f32.mrf.mxu0 }
  0xf5   :  { %v800_v45 = vadd.f32 %v799_v41, %v737_v38  ;;  %v668_v46 = vadd.f32 %v997_v27, %v667_v40  ;;  %v739_v51 = vmul.f32 %v463_v42, %v463_v42 }
  0xf6   :  { %v1001_v47 = vpop.f32.mrf.mxu0 }
  0xf7   :  { %v669_v50 = vadd.f32 %v668_v46, %v463_v42  ;;  %v801_v52 = vadd.f32 %v800_v45, %v738_v43  ;;  %v742_v0 = vmul.f32 %v1001_v47, %v1001_v47 }
  0xf8   :  { %v466_v53 = vpop.f32.mrf.mxu0 }
  0xf9   :  { %v802_v54 = vadd.f32 %v801_v52, %v739_v51  ;;  %v670_v56 = vadd.f32 %v669_v50, %v466_v53  ;;  %v740_v57 = vmul.f32 %v466_v53, %v466_v53 }
  0xfa   :  { %v1004_v58 = vpop.f32.mrf.mxu0 }
  0xfb   :  { %v671_v61 = vadd.f32 %v1000_v36, %v670_v56  ;;  %v803_v62 = vadd.f32 %v802_v54, %v740_v57  ;;  %v745_v16 = vmul.f32 %v1004_v58, %v1004_v58 }
  0xfc   :  { %v479_v63 = vpop.f32.mrf.mxu0 }
  0xfd   :  { %v804_v2 = vadd.f32 %v803_v62, %v741_v60  ;;  %v672_v3 = vadd.f32 %v1001_v47, %v671_v61  ;;  %v743_v7 = vmul.f32 %v479_v63, %v479_v63  ;;  %v578_v47 = vpop.f32.mrf.mxu1 }
  0xfe   :  { %v1005_v4 = vpop.f32.mrf.mxu0 }
  0xff   :  { %v673_v6 = vadd.f32 %v672_v3, %v479_v63  ;;  %v805_v8 = vadd.f32 %v804_v2, %v742_v0  ;;  %v746_v21 = vmul.f32 %v1005_v4, %v1005_v4 }
 0x100   :  { %v482_v9 = vpop.f32.mrf.mxu0 }
 0x101   :  { %v806_v11 = vadd.f32 %v805_v8, %v743_v7  ;;  %v674_v12 = vadd.f32 %v673_v6, %v482_v9  ;;  %v744_v13 = vmul.f32 %v482_v9, %v482_v9  ;;  %v756_v9 = vmul.f32 %v1253_v55, %v1253_v55 }
 0x102   :  { %v1008_v14 = vpop.f32.mrf.mxu0 }
 0x103   :  { %v675_v17 = vadd.f32 %v1004_v58, %v674_v12  ;;  %v807_v18 = vadd.f32 %v806_v11, %v744_v13  ;;  %v749_v36 = vmul.f32 %v1008_v14, %v1008_v14  ;;  %v1280_v58 = vpop.f32.mrf.mxu1  ;;  %v757_v13 = vmul.f32 %v1247_v39, %v1247_v39 }
 0x104   :  { %v495_v20 = vpop.f32.mrf.mxu0 }
 0x105   :  { %v808_v22 = vadd.f32 %v807_v18, %v745_v16  ;;  %v676_v23 = vadd.f32 %v1005_v4, %v675_v17  ;;  %v747_v27 = vmul.f32 %v495_v20, %v495_v20  ;;  %v591_v3 = vpop.f32.mrf.mxu1  ;;  %v755_v4 = vmul.f32 %v1249_v44, %v1249_v44 }
 0x106   :  { %v1009_v24 = vpop.f32.mrf.mxu0  ;;  %v758_v17 = vmul.f32 %v1251_v49, %v1251_v49 }
 0x107   :  { %v677_v26 = vadd.f32 %v676_v23, %v495_v20  ;;  %v809_v29 = vadd.f32 %v808_v22, %v746_v21  ;;  %v750_v42 = vmul.f32 %v1009_v24, %v1009_v24  ;;  %v1033_v12 = vpop.f32.mrf.mxu1 }
 0x108   :  { %v498_v30 = vpop.f32.mrf.mxu0 }
 0x109   :  { %v810_v31 = vadd.f32 %v809_v29, %v747_v27  ;;  %v678_v32 = vadd.f32 %v677_v26, %v498_v30  ;;  %v748_v33 = vmul.f32 %v498_v30, %v498_v30  ;;  %v761_v27 = vmul.f32 %v1258_v1, %v1258_v1 }
 0x10a   :  { %v1012_v34 = vpop.f32.mrf.mxu0  ;;  %v762_v30 = vmul.f32 %v1262_v19, %v1262_v19 }
 0x10b   :  { %v679_v38 = vadd.f32 %v1008_v14, %v678_v32  ;;  %v811_v40 = vadd.f32 %v810_v31, %v748_v33  ;;  %v753_v60 = vmul.f32 %v1012_v34, %v1012_v34 }
 0x10c   :  { %v511_v41 = vpop.f32.mrf.mxu0 }
 0x10d   :  { %v812_v43 = vadd.f32 %v811_v40, %v749_v36  ;;  %v680_v45 = vadd.f32 %v1009_v24, %v679_v38  ;;  %v751_v51 = vmul.f32 %v511_v41, %v511_v41 }
 0x10e   :  { %v1013_v46 = vpop.f32.mrf.mxu0 }
 0x10f   :  { %v681_v50 = vadd.f32 %v680_v45, %v511_v41  ;;  %v813_v52 = vadd.f32 %v812_v43, %v750_v42  ;;  %v754_v63 = vmul.f32 %v1013_v46, %v1013_v46  ;;  %v765_v41 = vmul.f32 %v1266_v37, %v1266_v37 }
 0x110   :  { %v514_v53 = vpop.f32.mrf.mxu0  ;;  %v766_v43 = vmul.f32 %v1270_v59, %v1270_v59 }
 0x111   :  { %v814_v54 = vadd.f32 %v813_v52, %v751_v51  ;;  %v682_v56 = vadd.f32 %v681_v50, %v514_v53  ;;  %v752_v57 = vmul.f32 %v514_v53, %v514_v53  ;;  %v767_v51 = vmul.f32 %v1276_v25, %v1276_v25 }
 0x113   :  { %v683_v61 = vadd.f32 %v1012_v34, %v682_v56  ;;  %v815_v62 = vadd.f32 %v814_v54, %v752_v57  ;;  %v763_v34 = vmul.f32 %v1268_v48, %v1268_v48  ;;  %v768_v54 = vmul.f32 %v578_v47, %v578_v47 }
 0x115   :  { %v684_v0 = vadd.f32 %v1013_v46, %v683_v61  ;;  %v816_v2 = vadd.f32 %v815_v62, %v753_v60 }
 0x117   :  { %v817_v6 = vadd.f32 %v816_v2, %v754_v63  ;;  %v685_v7 = vadd.f32 %v684_v0, %v1249_v44  ;;  %v594_v44 = vpop.f32.mrf.mxu1 }
 0x119   :  { %v686_v8 = vadd.f32 %v685_v7, %v1253_v55  ;;  %v818_v11 = vadd.f32 %v817_v6, %v755_v4  ;;  %v759_v55 = vmul.f32 %v1260_v10, %v1260_v10  ;;  %v1036_v26 = vpop.f32.mrf.mxu1 }
 0x11b   :  { %v687_v14 = vadd.f32 %v1247_v39, %v686_v8  ;;  %v819_v16 = vadd.f32 %v818_v11, %v756_v9  ;;  %v760_v39 = vmul.f32 %v1264_v28, %v1264_v28  ;;  %v607_v32 = vpop.f32.mrf.mxu1  ;;  %v773_v8 = vmul.f32 %v1280_v58, %v1280_v58 }
 0x11c   :  { %v774_v11 = vmul.f32 %v1033_v12, %v1033_v12 }
 0x11d   :  { %v820_v18 = vadd.f32 %v819_v16, %v757_v13  ;;  %v688_v20 = vadd.f32 %v1251_v49, %v687_v14  ;;  %v1037_v40 = vpop.f32.mrf.mxu1 }
 0x11f   :  { %v689_v21 = vadd.f32 %v688_v20, %v1260_v10  ;;  %v821_v22 = vadd.f32 %v820_v18, %v758_v17  ;;  %v610_v46 = vpop.f32.mrf.mxu1 }
 0x121   :  { %v822_v23 = vadd.f32 %v821_v22, %v759_v55  ;;  %v690_v24 = vadd.f32 %v689_v21, %v1264_v28  ;;  %v1040_v56 = vpop.f32.mrf.mxu1  ;;  %v776_v21 = vmul.f32 %v610_v46, %v610_v46  ;;  %v777_v22 = vmul.f32 %v1036_v26, %v1036_v26 }
 0x123   :  { %v691_v29 = vadd.f32 %v1258_v1, %v690_v24  ;;  %v823_v49 = vadd.f32 %v822_v23, %v760_v39  ;;  %v764_v1 = vmul.f32 %v1272_v5, %v1272_v5  ;;  %v623_v63 = vpop.f32.mrf.mxu1  ;;  %v778_v24 = vmul.f32 %v1037_v40, %v1037_v40 }
 0x125   :  { %v824_v31 = vadd.f32 %v823_v49, %v761_v27  ;;  %v692_v10 = vadd.f32 %v1262_v19, %v691_v29  ;;  %v1041_v7 = vpop.f32.mrf.mxu1  ;;  %v779_v49 = vmul.f32 %v623_v63, %v623_v63 }
 0x127   :  { %v693_v33 = vadd.f32 %v692_v10, %v1268_v48  ;;  %v825_v28 = vadd.f32 %v824_v31, %v762_v30  ;;  %v626_v16 = vpop.f32.mrf.mxu1 }
 0x128   :  { %v780_v10 = vmul.f32 %v626_v16, %v626_v16 }
 0x129   :  { %v826_v36 = vadd.f32 %v825_v28, %v763_v34  ;;  %v694_v38 = vadd.f32 %v693_v33, %v1272_v5  ;;  %v1044_v55 = vpop.f32.mrf.mxu1 }
 0x12b   :  { %v695_v42 = vadd.f32 %v1266_v37, %v694_v38  ;;  %v827_v19 = vadd.f32 %v826_v36, %v764_v1  ;;  %v769_v37 = vmul.f32 %v1274_v15, %v1274_v15  ;;  %v639_v29 = vpop.f32.mrf.mxu1  ;;  %v782_v36 = vmul.f32 %v1041_v7, %v1041_v7 }
 0x12d   :  { %v828_v45 = vadd.f32 %v827_v19, %v765_v41  ;;  %v696_v48 = vadd.f32 %v1270_v59, %v695_v42  ;;  %v770_v59 = vmul.f32 %v1278_v35, %v1278_v35  ;;  %v1045_v33 = vpop.f32.mrf.mxu1  ;;  %v783_v42 = vmul.f32 %v639_v29, %v639_v29 }
 0x12f   :  { %v697_v50 = vadd.f32 %v696_v48, %v1276_v25  ;;  %v829_v5 = vadd.f32 %v828_v45, %v766_v43  ;;  %v771_v25 = vmul.f32 %v591_v3, %v591_v3  ;;  %v642_v41 = vpop.f32.mrf.mxu1  ;;  %v785_v48 = vmul.f32 %v1044_v55, %v1044_v55 }
 0x130   :  { %v784_v45 = vmul.f32 %v642_v41, %v642_v41 }
 0x131   :  { %v830_v52 = vadd.f32 %v829_v5, %v767_v51  ;;  %v698_v53 = vadd.f32 %v697_v50, %v578_v47  ;;  %v772_v47 = vmul.f32 %v594_v44, %v594_v44  ;;  %v786_v51 = vmul.f32 %v1045_v33, %v1045_v33 }
 0x133   :  { %v699_v57 = vadd.f32 %v1274_v15, %v698_v53  ;;  %v831_v60 = vadd.f32 %v830_v52, %v768_v54 }
 0x135   :  { %v832_v61 = vadd.f32 %v831_v60, %v769_v37  ;;  %v700_v62 = vadd.f32 %v1278_v35, %v699_v57  ;;  %v775_v35 = vmul.f32 %v607_v32, %v607_v32 }
 0x137   :  { %v701_v0 = vadd.f32 %v700_v62, %v591_v3  ;;  %v833_v2 = vadd.f32 %v832_v61, %v770_v59 }
 0x139   :  { %v834_v4 = vadd.f32 %v833_v2, %v771_v25  ;;  %v702_v6 = vadd.f32 %v701_v0, %v594_v44 }
 0x13b   :  { %v703_v15 = vadd.f32 %v1280_v58, %v702_v6  ;;  %v835_v9 = vadd.f32 %v834_v4, %v772_v47  ;;  %v861_v4 = vld [vmem:[%s1338_s2] sm:$0x3] }
 0x13d   :  { %v836_v13 = vadd.f32 %v835_v9, %v773_v8  ;;  %v704_v14 = vadd.f32 %v1033_v12, %v703_v15 }
 0x13f   :  { %v705_v17 = vadd.f32 %v704_v14, %v607_v32  ;;  %v837_v18 = vadd.f32 %v836_v13, %v774_v11  ;;  %v781_v32 = vmul.f32 %v1040_v56, %v1040_v56 }
 0x141   :  { %v838_v20 = vadd.f32 %v837_v18, %v775_v35  ;;  %v706_v3 = vadd.f32 %v705_v17, %v610_v46 }
 0x143   :  { %v707_v44 = vadd.f32 %v1036_v26, %v706_v3  ;;  %v839_v23 = vadd.f32 %v838_v20, %v776_v21 }
 0x145   :  { %v840_v39 = vadd.f32 %v839_v23, %v777_v22  ;;  %v708_v27 = vadd.f32 %v1037_v40, %v707_v44 }
 0x147   :  { %v709_v58 = vadd.f32 %v708_v27, %v623_v63  ;;  %v841_v30 = vadd.f32 %v840_v39, %v778_v24 }
 0x149   :  { %v842_v31 = vadd.f32 %v841_v30, %v779_v49  ;;  %v710_v12 = vadd.f32 %v709_v58, %v626_v16 }
 0x14b   :  { %v711_v34 = vadd.f32 %v1040_v56, %v710_v12  ;;  %v843_v28 = vadd.f32 %v842_v31, %v780_v10 }
 0x14d   :  { %v844_v38 = vadd.f32 %v843_v28, %v781_v32  ;;  %v712_v1 = vadd.f32 %v1041_v7, %v711_v34 }
 0x14f   :  { %v713_v26 = vadd.f32 %v712_v1, %v639_v29  ;;  %v845_v19 = vadd.f32 %v844_v38, %v782_v36 }
 0x151   :  { %v846_v43 = vadd.f32 %v845_v19, %v783_v42  ;;  %v714_v40 = vadd.f32 %v713_v26, %v642_v41 }
 0x153   :  { %v715_v46 = vadd.f32 %v1044_v55, %v714_v40  ;;  %v847_v50 = vadd.f32 %v846_v43, %v784_v45 }
 0x155   :  { %v716_v5 = vadd.f32 %v1045_v33, %v715_v46  ;;  %v848_v52 = vadd.f32 %v847_v50, %v785_v48 }
 0x157   :  { %v717_v53 = vrot.slane %v716_v5, 4  ;;  %v849_v54 = vadd.f32 %v848_v52, %v786_v51 }
 0x159   :  { %v718_v56 = vadd.f32 %v717_v53, %v716_v5  ;;  %v850_v37 = vrot.slane %v849_v54, 4 }
 0x15b   :  { %v719_v57 = vrot.slane %v718_v56, 2  ;;  %v851_v60 = vadd.f32 %v850_v37, %v849_v54 }
 0x15d   :  { %v720_v59 = vadd.f32 %v719_v57, %v718_v56  ;;  %v852_v61 = vrot.slane %v851_v60, 2 }
 0x15f   :  { %v721_v62 = vrot.slane %v720_v59, 1  ;;  %v853_v63 = vadd.f32 %v852_v61, %v851_v60 }
 0x161   :  { %v854_v0 = vrot.slane %v853_v63, 1  ;;  %v722_v25 = vadd.f32 %v721_v62, %v720_v59 }
 0x163   :  { %v855_v2 = vadd.f32 %v854_v0, %v853_v63 }
 0x165   :  { %v863_v6 = vsel %vm862_vm1, %v722_v25, %v855_v2 }
 0x166   :  { %v864_v47 = vadd.f32 %v863_v6, %v861_v4 }
 0x168   :  { %865 = vst [vmem:[%s1338_s2] sm:$0x3] %v864_v47 }

// kernel: decoder_block_forward.3
= control target key start
LH: loop header
LB: loop body
LE: loop exit
PB: predicated region body
PF: predicated region fallthrough
CT: control target
= control target key end

     0   :  { %vm274_vm0 = vcmask 523264   ;;  %s2130_s1 = inlined_call_operand.vmem [shape: bf16[64,128], index: 1, kind: input, shape index: {}]   ;;  %s2131_s0 = inlined_call_operand.vmem [shape: bf16[512,64], index: 0, kind: input, shape index: {}]   ;;  %s2132_s2 = inlined_call_operand.vmem [shape: f32[1,128], index: 2, kind: input, shape index: {}]   ;;  %s2133_s3 = inlined_call_operand.vmem [shape: f32[1,128], index: 3, kind: input, shape index: {}]   ;;  %s2134_s4 = inlined_call_operand.vmem [shape: bf16[512,128], index: 4, kind: output, shape index: {}]  }
   0x1   :  { %v1695_v0 = vld [vmem:[%s2130_s1 + $0x18] sm:$0xff]   ;;  %v1696_v1 = vld [vmem:[%s2130_s1 + $0x10] sm:$0xff]   ;;  %v1697_v2 = vld [vmem:[%s2130_s1 + $0x8] sm:$0xff]  }
   0x2   :  { %1615 = vmatprep.subr.bf16.mxu0 %v1695_v0  ;;  %1687 = vmatprep.subr.bf16.mxu1 %v1695_v0  ;;  %v1699_v3 = vld [vmem:[%s2131_s0] sm:$0xff]   ;;  %v1701_v6 = vld [vmem:[%s2131_s0 + $0x8] sm:$0xff]   ;;  %v1703_v8 = vld [vmem:[%s2131_s0 + $0x10] sm:$0xff]  }
   0x3   :  { %1616 = vmatpush3.bf16.msra.mxu0 %v1695_v0  ;;  %1691 = vmatpush3.bf16.msra.mxu1 %v1695_v0  ;;  %v1700_v4 = vld [vmem:[%s2131_s0 + $0x80] sm:$0xff]   ;;  %v1702_v7 = vld [vmem:[%s2131_s0 + $0x88] sm:$0xff]   ;;  %v1704_v9 = vld [vmem:[%s2131_s0 + $0x90] sm:$0xff]  }
   0x4   :  { %1617 = vmatprep.subr.bf16.mxu0 %v1696_v1  ;;  %1688 = vmatprep.subr.bf16.mxu1 %v1696_v1  ;;  %v1698_v5 = vld [vmem:[%s2130_s1] sm:$0xff]   ;;  %v1705_v10 = vld [vmem:[%s2131_s0 + $0x18] sm:$0xff]   ;;  %v1709_v14 = vld [vmem:[%s2131_s0 + $0x28] sm:$0xff]  }
   0x5   :  { %1623 = vmatprep.mubr.msk.bf16.mxu0 %vm274_vm0, %v1699_v3  ;;  %1655 = vmatprep.mubr.msk.bf16.mxu1 %vm274_vm0, %v1700_v4  ;;  %v1706_v11 = vld [vmem:[%s2131_s0 + $0x98] sm:$0xff]   ;;  %v1707_v12 = vld [vmem:[%s2131_s0 + $0x20] sm:$0xff]   ;;  %v1710_v15 = vld [vmem:[%s2131_s0 + $0xa8] sm:$0xff]  }
   0x6   :  { %v1708_v13 = vld [vmem:[%s2131_s0 + $0xa0] sm:$0xff]   ;;  %v1711_v16 = vld [vmem:[%s2131_s0 + $0x30] sm:$0xff]   ;;  %v1713_v18 = vld [vmem:[%s2131_s0 + $0x38] sm:$0xff]  }
   0x7   :  { %1618 = vmatpush3.bf16.msra.mxu0 %v1696_v1  ;;  %1692 = vmatpush3.bf16.msra.mxu1 %v1696_v1  ;;  %v1712_v17 = vld [vmem:[%s2131_s0 + $0xb0] sm:$0xff]   ;;  %v1714_v19 = vld [vmem:[%s2131_s0 + $0xb8] sm:$0xff]   ;;  %v1715_v20 = vld [vmem:[%s2131_s0 + $0x40] sm:$0xff]  }
   0x8   :  { %1619 = vmatprep.subr.bf16.mxu0 %v1697_v2  ;;  %1689 = vmatprep.subr.bf16.mxu1 %v1697_v2  ;;  %v1716_v21 = vld [vmem:[%s2131_s0 + $0xc0] sm:$0xff]   ;;  %v1717_v22 = vld [vmem:[%s2131_s0 + $0x48] sm:$0xff]   ;;  %v1719_v24 = vld [vmem:[%s2131_s0 + $0x50] sm:$0xff]  }
   0x9   :  { %v1718_v23 = vld [vmem:[%s2131_s0 + $0xc8] sm:$0xff]   ;;  %v1720_v25 = vld [vmem:[%s2131_s0 + $0xd0] sm:$0xff]   ;;  %v1721_v26 = vld [vmem:[%s2131_s0 + $0x58] sm:$0xff]  }
   0xa   :  { %v1722_v27 = vld [vmem:[%s2131_s0 + $0xd8] sm:$0xff]   ;;  %v1723_v28 = vld [vmem:[%s2131_s0 + $0x60] sm:$0xff]   ;;  %v1725_v30 = vld [vmem:[%s2131_s0 + $0x68] sm:$0xff]  }
   0xb   :  { %1620 = vmatpush3.bf16.msra.mxu0 %v1697_v2  ;;  %1693 = vmatpush3.bf16.msra.mxu1 %v1697_v2  ;;  %v1724_v29 = vld [vmem:[%s2131_s0 + $0xe0] sm:$0xff]   ;;  %v1726_v31 = vld [vmem:[%s2131_s0 + $0xe8] sm:$0xff]   ;;  %v1727_v32 = vld [vmem:[%s2131_s0 + $0x70] sm:$0xff]  }
   0xc   :  { %1621 = vmatprep.subr.bf16.mxu0 %v1698_v5  ;;  %1690 = vmatprep.subr.bf16.mxu1 %v1698_v5  ;;  %v1728_v33 = vld [vmem:[%s2131_s0 + $0xf0] sm:$0xff]   ;;  %v1729_v34 = vld [vmem:[%s2131_s0 + $0x78] sm:$0xff]   ;;  %v1899_v36 = vld [vmem:[%s2132_s2] ss:$0 sm:$0xff] }
   0xd   :  { %v1730_v35 = vld [vmem:[%s2131_s0 + $0xf8] sm:$0xff]   ;;  %v1906_v41 = vld [vmem:[%s2133_s3] ss:$0 sm:$0xff] }
   0xf   :  { %1622 = vmatpush3.bf16.msra.mxu0 %v1698_v5  ;;  %1694 = vmatpush3.bf16.msra.mxu1 %v1698_v5 }
  0x12   :  { %1624 = vmatmul.mubr.msk.bf16.vlgmr.msra.gmra.mxu0 %vm274_vm0, %v1701_v6  ;;  %1656 = vmatmul.mubr.msk.bf16.vlgmr.msra.gmra.mxu1 %vm274_vm0, %v1702_v7 }
  0x13   :  { %1627 = vmatprep.mubr.msk.bf16.mxu0 %vm274_vm0, %v1703_v8  ;;  %1659 = vmatprep.mubr.msk.bf16.mxu1 %vm274_vm0, %v1704_v9 }
  0x1a   :  { %1628 = vmatmul.mubr.msk.bf16.gmra.mxu0 %vm274_vm0, %v1705_v10  ;;  %1660 = vmatmul.mubr.msk.bf16.gmra.mxu1 %vm274_vm0, %v1706_v11 }
  0x1b   :  { %1631 = vmatprep.mubr.msk.bf16.mxu0 %vm274_vm0, %v1707_v12  ;;  %1663 = vmatprep.mubr.msk.bf16.mxu1 %vm274_vm0, %v1708_v13 }
  0x22   :  { %1632 = vmatmul.mubr.msk.bf16.gmra.mxu0 %vm274_vm0, %v1709_v14  ;;  %1664 = vmatmul.mubr.msk.bf16.gmra.mxu1 %vm274_vm0, %v1710_v15 }
  0x23   :  { %1635 = vmatprep.mubr.msk.bf16.mxu0 %vm274_vm0, %v1711_v16  ;;  %1667 = vmatprep.mubr.msk.bf16.mxu1 %vm274_vm0, %v1712_v17 }
  0x2a   :  { %1636 = vmatmul.mubr.msk.bf16.gmra.mxu0 %vm274_vm0, %v1713_v18  ;;  %1668 = vmatmul.mubr.msk.bf16.gmra.mxu1 %vm274_vm0, %v1714_v19 }
  0x2b   :  { %1639 = vmatprep.mubr.msk.bf16.mxu0 %vm274_vm0, %v1715_v20  ;;  %1671 = vmatprep.mubr.msk.bf16.mxu1 %vm274_vm0, %v1716_v21 }
  0x32   :  { %1640 = vmatmul.mubr.msk.bf16.gmra.mxu0 %vm274_vm0, %v1717_v22  ;;  %1672 = vmatmul.mubr.msk.bf16.gmra.mxu1 %vm274_vm0, %v1718_v23 }
  0x33   :  { %1643 = vmatprep.mubr.msk.bf16.mxu0 %vm274_vm0, %v1719_v24  ;;  %1675 = vmatprep.mubr.msk.bf16.mxu1 %vm274_vm0, %v1720_v25 }
  0x3a   :  { %1644 = vmatmul.mubr.msk.bf16.gmra.mxu0 %vm274_vm0, %v1721_v26  ;;  %1676 = vmatmul.mubr.msk.bf16.gmra.mxu1 %vm274_vm0, %v1722_v27 }
  0x3b   :  { %1647 = vmatprep.mubr.msk.bf16.mxu0 %vm274_vm0, %v1723_v28  ;;  %1679 = vmatprep.mubr.msk.bf16.mxu1 %vm274_vm0, %v1724_v29 }
  0x42   :  { %1648 = vmatmul.mubr.msk.bf16.gmra.mxu0 %vm274_vm0, %v1725_v30  ;;  %1680 = vmatmul.mubr.msk.bf16.gmra.mxu1 %vm274_vm0, %v1726_v31 }
  0x43   :  { %1651 = vmatprep.mubr.msk.bf16.mxu0 %vm274_vm0, %v1727_v32  ;;  %1683 = vmatprep.mubr.msk.bf16.mxu1 %vm274_vm0, %v1728_v33 }
  0x4a   :  { %1652 = vmatmul.mubr.msk.bf16.gmra.mxu0 %vm274_vm0, %v1729_v34  ;;  %1684 = vmatmul.mubr.msk.bf16.gmra.mxu1 %vm274_vm0, %v1730_v35 }
  0xd2   :  { %v1625_v37 = vpop.f32.mrf.mxu0  ;;  %v1657_v38 = vpop.f32.mrf.mxu1 }
  0xd3   :  { %v669_v39 = vmul.f32 %v1625_v37, %v1899_v36  ;;  %v701_v40 = vmul.f32 %v1657_v38, %v1899_v36 }
  0xd4   :  { %v405_v42 = vpop.f32.mrf.mxu0  ;;  %v533_v43 = vpop.f32.mrf.mxu1 }
  0xd5   :  { %v667_v44 = vmul.f32 %v1899_v36, %v405_v42  ;;  %v699_v45 = vmul.f32 %v1899_v36, %v533_v43  ;;  %v740_v48 = vadd.f32 %v1906_v41, %v669_v39  ;;  %v772_v49 = vadd.f32 %v1906_v41, %v701_v40 }
  0xd6   :  { %v1626_v46 = vpop.f32.mrf.mxu0  ;;  %v1658_v47 = vpop.f32.mrf.mxu1 }
  0xd7   :  { %v670_v50 = vmul.f32 %v1626_v46, %v1899_v36  ;;  %v702_v51 = vmul.f32 %v1658_v47, %v1899_v36  ;;  %v738_v54 = vadd.f32 %v1906_v41, %v667_v44  ;;  %v770_v55 = vadd.f32 %v1906_v41, %v699_v45 }
  0xd8   :  { %v408_v52 = vpop.f32.mrf.mxu0  ;;  %v536_v53 = vpop.f32.mrf.mxu1  ;;  %v804_v62 = vmax.f32 %v740_v48, 0.0  ;;  %v836_v63 = vmax.f32 %v772_v49, 0.0 }
  0xd9   :  { %v668_v56 = vmul.f32 %v1899_v36, %v408_v52  ;;  %v700_v57 = vmul.f32 %v1899_v36, %v536_v53  ;;  %v741_v58 = vadd.f32 %v1906_v41, %v670_v50  ;;  %v773_v59 = vadd.f32 %v1906_v41, %v702_v51 }
  0xda   :  { %v1629_v60 = vpop.f32.mrf.mxu0  ;;  %v1661_v61 = vpop.f32.mrf.mxu1  ;;  %v802_v8 = vmax.f32 %v738_v54, 0.0  ;;  %v834_v9 = vmax.f32 %v770_v55, 0.0 }
  0xdb   :  { %v739_v0 = vadd.f32 %v1906_v41, %v668_v56  ;;  %v771_v1 = vadd.f32 %v1906_v41, %v700_v57  ;;  %v805_v2 = vmax.f32 %v741_v58, 0.0  ;;  %v837_v3 = vmax.f32 %v773_v59, 0.0 }
  0xdc   :  { %v673_v4 = vmul.f32 %v1629_v60, %v1899_v36  ;;  %v705_v5 = vmul.f32 %v1661_v61, %v1899_v36  ;;  %v421_v6 = vpop.f32.mrf.mxu0  ;;  %v549_v7 = vpop.f32.mrf.mxu1 }
  0xdd   :  { %v803_v10 = vmax.f32 %v739_v0, 0.0  ;;  %v835_v11 = vmax.f32 %v771_v1, 0.0  ;;  %v1396_v12 = vpack.c.bf16 %v805_v2, %v804_v62  ;;  %v1476_v13 = vpack.c.bf16 %v837_v3, %v836_v63 }
  0xde   :  { %v671_v14 = vmul.f32 %v1899_v36, %v421_v6  ;;  %v703_v15 = vmul.f32 %v1899_v36, %v549_v7  ;;  %v1630_v16 = vpop.f32.mrf.mxu0  ;;  %v1662_v17 = vpop.f32.mrf.mxu1  ;;  %v744_v20 = vadd.f32 %v1906_v41, %v673_v4  ;;  %v776_v21 = vadd.f32 %v1906_v41, %v705_v5 }
  0xdf   :  { %v1391_v18 = vpack.c.bf16 %v803_v10, %v802_v8  ;;  %v1471_v19 = vpack.c.bf16 %v835_v11, %v834_v9  ;;  %1548 = vst [vmem:[%s2134_s4 + $0x8] sm:$0xff] %v1396_v12   ;;  %1564 = vst [vmem:[%s2134_s4 + $0x88] sm:$0xff] %v1476_v13   ;;  %v674_v22 = vmul.f32 %v1630_v16, %v1899_v36 }
  0xe0   :  { %v706_v23 = vmul.f32 %v1662_v17, %v1899_v36  ;;  %v424_v24 = vpop.f32.mrf.mxu0  ;;  %v552_v25 = vpop.f32.mrf.mxu1  ;;  %v742_v26 = vadd.f32 %v1906_v41, %v671_v14  ;;  %v774_v27 = vadd.f32 %v1906_v41, %v703_v15  ;;  %v808_v39 = vmax.f32 %v744_v20, 0.0 }
  0xe1   :  { %1392 = vst [vmem:[%s2134_s4] sm:$0xff] %v1391_v18   ;;  %1563 = vst [vmem:[%s2134_s4 + $0x80] sm:$0xff] %v1471_v19   ;;  %v672_v28 = vmul.f32 %v1899_v36, %v424_v24  ;;  %v704_v29 = vmul.f32 %v1899_v36, %v552_v25  ;;  %v745_v30 = vadd.f32 %v1906_v41, %v674_v22  ;;  %v840_v40 = vmax.f32 %v776_v21, 0.0 }
  0xe2   :  { %v777_v31 = vadd.f32 %v1906_v41, %v706_v23  ;;  %v1633_v32 = vpop.f32.mrf.mxu0  ;;  %v1665_v33 = vpop.f32.mrf.mxu1  ;;  %v806_v46 = vmax.f32 %v742_v26, 0.0  ;;  %v838_v47 = vmax.f32 %v774_v27, 0.0 }
  0xe3   :  { %v743_v34 = vadd.f32 %v1906_v41, %v672_v28  ;;  %v775_v35 = vadd.f32 %v1906_v41, %v704_v29  ;;  %v677_v37 = vmul.f32 %v1633_v32, %v1899_v36  ;;  %v709_v38 = vmul.f32 %v1665_v33, %v1899_v36 }
  0xe4   :  { %v809_v42 = vmax.f32 %v745_v30, 0.0  ;;  %v841_v43 = vmax.f32 %v777_v31, 0.0  ;;  %v437_v44 = vpop.f32.mrf.mxu0  ;;  %v565_v45 = vpop.f32.mrf.mxu1 }
  0xe5   :  { %v807_v48 = vmax.f32 %v743_v34, 0.0  ;;  %v839_v49 = vmax.f32 %v775_v35, 0.0  ;;  %v675_v52 = vmul.f32 %v1899_v36, %v437_v44  ;;  %v707_v53 = vmul.f32 %v1899_v36, %v565_v45 }
  0xe6   :  { %v1406_v50 = vpack.c.bf16 %v809_v42, %v808_v39  ;;  %v1486_v51 = vpack.c.bf16 %v841_v43, %v840_v40  ;;  %v1634_v54 = vpop.f32.mrf.mxu0  ;;  %v1666_v55 = vpop.f32.mrf.mxu1  ;;  %v748_v58 = vadd.f32 %v1906_v41, %v677_v37  ;;  %v780_v59 = vadd.f32 %v1906_v41, %v709_v38 }
  0xe7   :  { %v1401_v56 = vpack.c.bf16 %v807_v48, %v806_v46  ;;  %v1481_v57 = vpack.c.bf16 %v839_v49, %v838_v47  ;;  %v678_v60 = vmul.f32 %v1634_v54, %v1899_v36  ;;  %v710_v61 = vmul.f32 %v1666_v55, %v1899_v36 }
  0xe8   :  { %1550 = vst [vmem:[%s2134_s4 + $0x18] sm:$0xff] %v1406_v50   ;;  %1566 = vst [vmem:[%s2134_s4 + $0x98] sm:$0xff] %v1486_v51   ;;  %v440_v62 = vpop.f32.mrf.mxu0  ;;  %v568_v63 = vpop.f32.mrf.mxu1  ;;  %v746_v0 = vadd.f32 %v1906_v41, %v675_v52  ;;  %v778_v1 = vadd.f32 %v1906_v41, %v707_v53  ;;  %v812_v8 = vmax.f32 %v748_v58, 0.0  ;;  %v844_v9 = vmax.f32 %v780_v59, 0.0 }
  0xe9   :  { %1549 = vst [vmem:[%s2134_s4 + $0x10] sm:$0xff] %v1401_v56   ;;  %1565 = vst [vmem:[%s2134_s4 + $0x90] sm:$0xff] %v1481_v57   ;;  %v676_v2 = vmul.f32 %v1899_v36, %v440_v62  ;;  %v708_v3 = vmul.f32 %v1899_v36, %v568_v63  ;;  %v749_v4 = vadd.f32 %v1906_v41, %v678_v60 }
  0xea   :  { %v781_v5 = vadd.f32 %v1906_v41, %v710_v61  ;;  %v1637_v6 = vpop.f32.mrf.mxu0  ;;  %v1669_v7 = vpop.f32.mrf.mxu1  ;;  %v810_v18 = vmax.f32 %v746_v0, 0.0  ;;  %v842_v19 = vmax.f32 %v778_v1, 0.0 }
  0xeb   :  { %v747_v10 = vadd.f32 %v1906_v41, %v676_v2  ;;  %v779_v11 = vadd.f32 %v1906_v41, %v708_v3  ;;  %v813_v12 = vmax.f32 %v749_v4, 0.0  ;;  %v681_v14 = vmul.f32 %v1637_v6, %v1899_v36 }
  0xec   :  { %v845_v13 = vmax.f32 %v781_v5, 0.0  ;;  %v713_v15 = vmul.f32 %v1669_v7, %v1899_v36  ;;  %v453_v16 = vpop.f32.mrf.mxu0  ;;  %v581_v17 = vpop.f32.mrf.mxu1 }
  0xed   :  { %v811_v20 = vmax.f32 %v747_v10, 0.0  ;;  %v843_v21 = vmax.f32 %v779_v11, 0.0  ;;  %v1416_v22 = vpack.c.bf16 %v813_v12, %v812_v8  ;;  %v679_v24 = vmul.f32 %v1899_v36, %v453_v16 }
  0xee   :  { %v1496_v23 = vpack.c.bf16 %v845_v13, %v844_v9  ;;  %v711_v25 = vmul.f32 %v1899_v36, %v581_v17  ;;  %v1638_v26 = vpop.f32.mrf.mxu0  ;;  %v1670_v27 = vpop.f32.mrf.mxu1  ;;  %v752_v30 = vadd.f32 %v1906_v41, %v681_v14  ;;  %v784_v31 = vadd.f32 %v1906_v41, %v713_v15 }
  0xef   :  { %v1411_v28 = vpack.c.bf16 %v811_v20, %v810_v18  ;;  %v1491_v29 = vpack.c.bf16 %v843_v21, %v842_v19  ;;  %1552 = vst [vmem:[%s2134_s4 + $0x28] sm:$0xff] %v1416_v22   ;;  %v682_v32 = vmul.f32 %v1638_v26, %v1899_v36  ;;  %v714_v33 = vmul.f32 %v1670_v27, %v1899_v36 }
  0xf0   :  { %1568 = vst [vmem:[%s2134_s4 + $0xa8] sm:$0xff] %v1496_v23   ;;  %v456_v34 = vpop.f32.mrf.mxu0  ;;  %v584_v35 = vpop.f32.mrf.mxu1  ;;  %v750_v37 = vadd.f32 %v1906_v41, %v679_v24  ;;  %v782_v38 = vadd.f32 %v1906_v41, %v711_v25  ;;  %v816_v50 = vmax.f32 %v752_v30, 0.0  ;;  %v848_v51 = vmax.f32 %v784_v31, 0.0 }
  0xf1   :  { %1551 = vst [vmem:[%s2134_s4 + $0x20] sm:$0xff] %v1411_v28   ;;  %1567 = vst [vmem:[%s2134_s4 + $0xa0] sm:$0xff] %v1491_v29   ;;  %v680_v39 = vmul.f32 %v1899_v36, %v456_v34  ;;  %v712_v40 = vmul.f32 %v1899_v36, %v584_v35  ;;  %v753_v42 = vadd.f32 %v1906_v41, %v682_v32 }
  0xf2   :  { %v785_v43 = vadd.f32 %v1906_v41, %v714_v33  ;;  %v1641_v44 = vpop.f32.mrf.mxu0  ;;  %v1673_v45 = vpop.f32.mrf.mxu1  ;;  %v814_v56 = vmax.f32 %v750_v37, 0.0  ;;  %v846_v57 = vmax.f32 %v782_v38, 0.0 }
  0xf3   :  { %v751_v46 = vadd.f32 %v1906_v41, %v680_v39  ;;  %v783_v47 = vadd.f32 %v1906_v41, %v712_v40  ;;  %v685_v48 = vmul.f32 %v1641_v44, %v1899_v36  ;;  %v717_v49 = vmul.f32 %v1673_v45, %v1899_v36 }
  0xf4   :  { %v817_v52 = vmax.f32 %v753_v42, 0.0  ;;  %v849_v53 = vmax.f32 %v785_v43, 0.0  ;;  %v469_v54 = vpop.f32.mrf.mxu0  ;;  %v597_v55 = vpop.f32.mrf.mxu1 }
  0xf5   :  { %v815_v58 = vmax.f32 %v751_v46, 0.0  ;;  %v847_v59 = vmax.f32 %v783_v47, 0.0  ;;  %v683_v62 = vmul.f32 %v1899_v36, %v469_v54  ;;  %v715_v63 = vmul.f32 %v1899_v36, %v597_v55 }
  0xf6   :  { %v1426_v60 = vpack.c.bf16 %v817_v52, %v816_v50  ;;  %v1506_v61 = vpack.c.bf16 %v849_v53, %v848_v51  ;;  %v1642_v0 = vpop.f32.mrf.mxu0  ;;  %v1674_v1 = vpop.f32.mrf.mxu1  ;;  %v756_v4 = vadd.f32 %v1906_v41, %v685_v48  ;;  %v788_v5 = vadd.f32 %v1906_v41, %v717_v49 }
  0xf7   :  { %v1421_v2 = vpack.c.bf16 %v815_v58, %v814_v56  ;;  %v1501_v3 = vpack.c.bf16 %v847_v59, %v846_v57  ;;  %v686_v6 = vmul.f32 %v1642_v0, %v1899_v36  ;;  %v718_v7 = vmul.f32 %v1674_v1, %v1899_v36 }
  0xf8   :  { %1554 = vst [vmem:[%s2134_s4 + $0x38] sm:$0xff] %v1426_v60   ;;  %1570 = vst [vmem:[%s2134_s4 + $0xb8] sm:$0xff] %v1506_v61   ;;  %v472_v8 = vpop.f32.mrf.mxu0  ;;  %v600_v9 = vpop.f32.mrf.mxu1  ;;  %v754_v10 = vadd.f32 %v1906_v41, %v683_v62  ;;  %v786_v11 = vadd.f32 %v1906_v41, %v715_v63  ;;  %v820_v18 = vmax.f32 %v756_v4, 0.0  ;;  %v852_v19 = vmax.f32 %v788_v5, 0.0 }
  0xf9   :  { %1553 = vst [vmem:[%s2134_s4 + $0x30] sm:$0xff] %v1421_v2   ;;  %1569 = vst [vmem:[%s2134_s4 + $0xb0] sm:$0xff] %v1501_v3   ;;  %v684_v12 = vmul.f32 %v1899_v36, %v472_v8  ;;  %v716_v13 = vmul.f32 %v1899_v36, %v600_v9  ;;  %v757_v14 = vadd.f32 %v1906_v41, %v686_v6 }
  0xfa   :  { %v789_v15 = vadd.f32 %v1906_v41, %v718_v7  ;;  %v1645_v16 = vpop.f32.mrf.mxu0  ;;  %v1677_v17 = vpop.f32.mrf.mxu1  ;;  %v818_v28 = vmax.f32 %v754_v10, 0.0  ;;  %v850_v29 = vmax.f32 %v786_v11, 0.0 }
  0xfb   :  { %v755_v20 = vadd.f32 %v1906_v41, %v684_v12  ;;  %v787_v21 = vadd.f32 %v1906_v41, %v716_v13  ;;  %v821_v22 = vmax.f32 %v757_v14, 0.0  ;;  %v689_v24 = vmul.f32 %v1645_v16, %v1899_v36 }
  0xfc   :  { %v853_v23 = vmax.f32 %v789_v15, 0.0  ;;  %v721_v25 = vmul.f32 %v1677_v17, %v1899_v36  ;;  %v485_v26 = vpop.f32.mrf.mxu0  ;;  %v613_v27 = vpop.f32.mrf.mxu1 }
  0xfd   :  { %v819_v30 = vmax.f32 %v755_v20, 0.0  ;;  %v851_v31 = vmax.f32 %v787_v21, 0.0  ;;  %v1436_v32 = vpack.c.bf16 %v821_v22, %v820_v18  ;;  %v687_v34 = vmul.f32 %v1899_v36, %v485_v26 }
  0xfe   :  { %v1516_v33 = vpack.c.bf16 %v853_v23, %v852_v19  ;;  %v719_v35 = vmul.f32 %v1899_v36, %v613_v27  ;;  %v1646_v37 = vpop.f32.mrf.mxu0  ;;  %v1678_v38 = vpop.f32.mrf.mxu1  ;;  %v760_v42 = vadd.f32 %v1906_v41, %v689_v24  ;;  %v792_v43 = vadd.f32 %v1906_v41, %v721_v25 }
  0xff   :  { %v1431_v39 = vpack.c.bf16 %v819_v30, %v818_v28  ;;  %v1511_v40 = vpack.c.bf16 %v851_v31, %v850_v29  ;;  %1556 = vst [vmem:[%s2134_s4 + $0x48] sm:$0xff] %v1436_v32   ;;  %v690_v44 = vmul.f32 %v1646_v37, %v1899_v36  ;;  %v722_v45 = vmul.f32 %v1678_v38, %v1899_v36 }
 0x100   :  { %1572 = vst [vmem:[%s2134_s4 + $0xc8] sm:$0xff] %v1516_v33   ;;  %v488_v46 = vpop.f32.mrf.mxu0  ;;  %v616_v47 = vpop.f32.mrf.mxu1  ;;  %v758_v48 = vadd.f32 %v1906_v41, %v687_v34  ;;  %v790_v49 = vadd.f32 %v1906_v41, %v719_v35  ;;  %v824_v60 = vmax.f32 %v760_v42, 0.0  ;;  %v856_v61 = vmax.f32 %v792_v43, 0.0 }
 0x101   :  { %1555 = vst [vmem:[%s2134_s4 + $0x40] sm:$0xff] %v1431_v39   ;;  %1571 = vst [vmem:[%s2134_s4 + $0xc0] sm:$0xff] %v1511_v40   ;;  %v688_v50 = vmul.f32 %v1899_v36, %v488_v46  ;;  %v720_v51 = vmul.f32 %v1899_v36, %v616_v47  ;;  %v761_v52 = vadd.f32 %v1906_v41, %v690_v44 }
 0x102   :  { %v793_v53 = vadd.f32 %v1906_v41, %v722_v45  ;;  %v1649_v54 = vpop.f32.mrf.mxu0  ;;  %v1681_v55 = vpop.f32.mrf.mxu1  ;;  %v822_v2 = vmax.f32 %v758_v48, 0.0  ;;  %v854_v3 = vmax.f32 %v790_v49, 0.0 }
 0x103   :  { %v759_v56 = vadd.f32 %v1906_v41, %v688_v50  ;;  %v791_v57 = vadd.f32 %v1906_v41, %v720_v51  ;;  %v693_v58 = vmul.f32 %v1649_v54, %v1899_v36  ;;  %v725_v59 = vmul.f32 %v1681_v55, %v1899_v36 }
 0x104   :  { %v825_v62 = vmax.f32 %v761_v52, 0.0  ;;  %v857_v63 = vmax.f32 %v793_v53, 0.0  ;;  %v501_v0 = vpop.f32.mrf.mxu0  ;;  %v629_v1 = vpop.f32.mrf.mxu1 }
 0x105   :  { %v823_v4 = vmax.f32 %v759_v56, 0.0  ;;  %v855_v5 = vmax.f32 %v791_v57, 0.0  ;;  %v691_v8 = vmul.f32 %v1899_v36, %v501_v0  ;;  %v723_v9 = vmul.f32 %v1899_v36, %v629_v1 }
 0x106   :  { %v1446_v6 = vpack.c.bf16 %v825_v62, %v824_v60  ;;  %v1526_v7 = vpack.c.bf16 %v857_v63, %v856_v61  ;;  %v1650_v10 = vpop.f32.mrf.mxu0  ;;  %v1682_v11 = vpop.f32.mrf.mxu1  ;;  %v764_v14 = vadd.f32 %v1906_v41, %v693_v58  ;;  %v796_v15 = vadd.f32 %v1906_v41, %v725_v59 }
 0x107   :  { %v1441_v12 = vpack.c.bf16 %v823_v4, %v822_v2  ;;  %v1521_v13 = vpack.c.bf16 %v855_v5, %v854_v3  ;;  %v694_v16 = vmul.f32 %v1650_v10, %v1899_v36  ;;  %v726_v17 = vmul.f32 %v1682_v11, %v1899_v36 }
 0x108   :  { %1558 = vst [vmem:[%s2134_s4 + $0x58] sm:$0xff] %v1446_v6   ;;  %1574 = vst [vmem:[%s2134_s4 + $0xd8] sm:$0xff] %v1526_v7   ;;  %v504_v18 = vpop.f32.mrf.mxu0  ;;  %v632_v19 = vpop.f32.mrf.mxu1  ;;  %v762_v20 = vadd.f32 %v1906_v41, %v691_v8  ;;  %v794_v21 = vadd.f32 %v1906_v41, %v723_v9  ;;  %v828_v28 = vmax.f32 %v764_v14, 0.0  ;;  %v860_v29 = vmax.f32 %v796_v15, 0.0 }
 0x109   :  { %1557 = vst [vmem:[%s2134_s4 + $0x50] sm:$0xff] %v1441_v12   ;;  %1573 = vst [vmem:[%s2134_s4 + $0xd0] sm:$0xff] %v1521_v13   ;;  %v692_v22 = vmul.f32 %v1899_v36, %v504_v18  ;;  %v724_v23 = vmul.f32 %v1899_v36, %v632_v19  ;;  %v765_v24 = vadd.f32 %v1906_v41, %v694_v16 }
 0x10a   :  { %v797_v25 = vadd.f32 %v1906_v41, %v726_v17  ;;  %v1653_v26 = vpop.f32.mrf.mxu0  ;;  %v1685_v27 = vpop.f32.mrf.mxu1  ;;  %v826_v39 = vmax.f32 %v762_v20, 0.0  ;;  %v858_v40 = vmax.f32 %v794_v21, 0.0 }
 0x10b   :  { %v763_v30 = vadd.f32 %v1906_v41, %v692_v22  ;;  %v795_v31 = vadd.f32 %v1906_v41, %v724_v23  ;;  %v829_v32 = vmax.f32 %v765_v24, 0.0  ;;  %v697_v34 = vmul.f32 %v1653_v26, %v1899_v36 }
 0x10c   :  { %v861_v33 = vmax.f32 %v797_v25, 0.0  ;;  %v729_v35 = vmul.f32 %v1685_v27, %v1899_v36  ;;  %v517_v37 = vpop.f32.mrf.mxu0  ;;  %v645_v38 = vpop.f32.mrf.mxu1 }
 0x10d   :  { %v827_v42 = vmax.f32 %v763_v30, 0.0  ;;  %v859_v43 = vmax.f32 %v795_v31, 0.0  ;;  %v1456_v44 = vpack.c.bf16 %v829_v32, %v828_v28  ;;  %v695_v46 = vmul.f32 %v1899_v36, %v517_v37 }
 0x10e   :  { %v1536_v45 = vpack.c.bf16 %v861_v33, %v860_v29  ;;  %v727_v47 = vmul.f32 %v1899_v36, %v645_v38  ;;  %v1654_v48 = vpop.f32.mrf.mxu0  ;;  %v1686_v49 = vpop.f32.mrf.mxu1  ;;  %v768_v52 = vadd.f32 %v1906_v41, %v697_v34  ;;  %v800_v53 = vadd.f32 %v1906_v41, %v729_v35 }
 0x10f   :  { %v1451_v50 = vpack.c.bf16 %v827_v42, %v826_v39  ;;  %v1531_v51 = vpack.c.bf16 %v859_v43, %v858_v40  ;;  %1560 = vst [vmem:[%s2134_s4 + $0x68] sm:$0xff] %v1456_v44   ;;  %v698_v54 = vmul.f32 %v1654_v48, %v1899_v36  ;;  %v730_v55 = vmul.f32 %v1686_v49, %v1899_v36 }
 0x110   :  { %1576 = vst [vmem:[%s2134_s4 + $0xe8] sm:$0xff] %v1536_v45   ;;  %v520_v56 = vpop.f32.mrf.mxu0  ;;  %v648_v57 = vpop.f32.mrf.mxu1  ;;  %v766_v58 = vadd.f32 %v1906_v41, %v695_v46  ;;  %v798_v59 = vadd.f32 %v1906_v41, %v727_v47  ;;  %v832_v2 = vmax.f32 %v768_v52, 0.0  ;;  %v864_v3 = vmax.f32 %v800_v53, 0.0 }
 0x111   :  { %1559 = vst [vmem:[%s2134_s4 + $0x60] sm:$0xff] %v1451_v50   ;;  %1575 = vst [vmem:[%s2134_s4 + $0xe0] sm:$0xff] %v1531_v51   ;;  %v696_v60 = vmul.f32 %v1899_v36, %v520_v56  ;;  %v728_v61 = vmul.f32 %v1899_v36, %v648_v57  ;;  %v769_v62 = vadd.f32 %v1906_v41, %v698_v54 }
 0x112   :  { %v801_v63 = vadd.f32 %v1906_v41, %v730_v55  ;;  %v830_v6 = vmax.f32 %v766_v58, 0.0  ;;  %v862_v7 = vmax.f32 %v798_v59, 0.0 }
 0x113   :  { %v767_v0 = vadd.f32 %v1906_v41, %v696_v60  ;;  %v799_v1 = vadd.f32 %v1906_v41, %v728_v61  ;;  %v833_v4 = vmax.f32 %v769_v62, 0.0 }
 0x114   :  { %v865_v5 = vmax.f32 %v801_v63, 0.0 }
 0x115   :  { %v831_v8 = vmax.f32 %v767_v0, 0.0  ;;  %v863_v9 = vmax.f32 %v799_v1, 0.0  ;;  %v1466_v10 = vpack.c.bf16 %v833_v4, %v832_v2 }
 0x116   :  { %v1546_v11 = vpack.c.bf16 %v865_v5, %v864_v3 }
 0x117   :  { %v1461_v12 = vpack.c.bf16 %v831_v8, %v830_v6  ;;  %v1541_v36 = vpack.c.bf16 %v863_v9, %v862_v7  ;;  %1562 = vst [vmem:[%s2134_s4 + $0x78] sm:$0xff] %v1466_v10  }
 0x118   :  { %1578 = vst [vmem:[%s2134_s4 + $0xf8] sm:$0xff] %v1546_v11  }
 0x119   :  { %1561 = vst [vmem:[%s2134_s4 + $0x70] sm:$0xff] %v1461_v12   ;;  %1577 = vst [vmem:[%s2134_s4 + $0xf0] sm:$0xff] %v1541_v36  }

</bundles_post_ra>
